<compile_context>
chip_gen: v6e
topology: v6e:2x2x1
jax: 0.10.0
libtpu: 0.0.40
codegen_flags: <defaults>
</compile_context>

<pallas_src>
import functools
import numpy as np
import jax
import jax.numpy as jnp
from jax.experimental import pallas as pl
from jax.experimental.pallas import tpu as pltpu

LANE = 128
SUBLANE = 8
DEFAULT_TILE_ROWS = 2048   # (2048, 128) f32 block = 1 MiB per input


def _round_up(a, b):
    return (a + b - 1) // b * b


def _num_slices_for_hw():
    """2 reduction slices only on 2-TensorCore chips (v7x); 1 on v5e/v6e."""
    try:
        kind = jax.devices()[0].device_kind.lower()
    except Exception:
        return 1
    return 2 if "v7" in kind else 1


def _consistency_kernel(nm_ref, om_ref, ns_ref, os_ref, out_ref,
                        acc_inter, acc_osom, acc_num, acc_clamp,
                        *, tile_r, valid_rows, steps_per_slice, need_mask):
    c = pl.program_id(0)   # slice (megacore) index
    i = pl.program_id(1)   # step within slice

    @pl.when(i == 0)
    def _():
        acc_inter[...] = jnp.zeros_like(acc_inter)
        acc_osom[...] = jnp.zeros_like(acc_osom)
        acc_num[...] = jnp.zeros_like(acc_num)
        acc_clamp[...] = jnp.zeros_like(acc_clamp)

    nm = nm_ref[...].astype(jnp.float32)
    om = om_ref[...].astype(jnp.float32)
    ns = ns_ref[...].astype(jnp.float32)
    osg = os_ref[...].astype(jnp.float32)

    r = tile_r // SUBLANE  # tile_r is always a multiple of SUBLANE

    def _accumulate(nm, om, ns, osg):
        # difference(a, b) = a*(1-b) + b*(1-a) == a + b - 2*a*b
        s1 = nm + om
        s2 = ns + osg
        d_mask = s1 - 2.0 * (nm * om)
        d_seg = s2 - 2.0 * (ns * osg)
        num = d_mask + d_seg - 2.0 * (d_mask * d_seg)
        clamped = jnp.clip(s1 + s2, 0.0, 1.0)
        # Tree-reduce each quantity to an (8, 128) partial with pure VALU adds
        # (leading-axis sum of whole vregs; no XLU, no extra vld/vst traffic).
        acc_inter[...] += (osg * om).reshape(r, SUBLANE, LANE).sum(axis=0)
        acc_osom[...] += (osg + om).reshape(r, SUBLANE, LANE).sum(axis=0)
        acc_num[...] += num.reshape(r, SUBLANE, LANE).sum(axis=0)
        acc_clamp[...] += clamped.reshape(r, SUBLANE, LANE).sum(axis=0)

    if need_mask:
        blk = c * steps_per_slice + i
        is_boundary = (blk + 1) * tile_r > valid_rows

        # Interior blocks: unmasked fast path.
        @pl.when(jnp.logical_not(is_boundary))
        def _():
            _accumulate(nm, om, ns, osg)

        # Boundary / clamped-duplicate blocks: guard stale VMEM rows.
        @pl.when(is_boundary)
        def _():
            row = blk * tile_r + jax.lax.broadcasted_iota(
                jnp.int32, (tile_r, LANE), 0)
            valid = row < valid_rows
            zero = jnp.float32(0.0)
            _accumulate(jnp.where(valid, nm, zero),
                        jnp.where(valid, om, zero),
                        jnp.where(valid, ns, zero),
                        jnp.where(valid, osg, zero))
    else:
        _accumulate(nm, om, ns, osg)

    @pl.when(i == steps_per_slice - 1)
    def _():
        # Single lane-dense (1, 32, 128) store: [inter | os+om | num | clamp].
        out_ref[...] = jnp.concatenate(
            [acc_inter[...], acc_osom[...], acc_num[...], acc_clamp[...]],
            axis=0)[None]


def _as_rows(x):
    """Lane-dense 2D view.  Free reshape when size % 128 == 0 (the common case
    for seg masks)."""
    total = x.size
    if total % LANE == 0:
        return x.reshape(total // LANE, LANE)
    # TODO(synk): pad fallback materializes an HBM copy; handle the flat tail
    # in-kernel (1-D BlockSpec / BoundedSlice) to avoid it for odd sizes.
    pad = LANE - total % LANE
    return jnp.pad(x.reshape(-1), (0, pad)).reshape(-1, LANE)


@functools.partial(jax.jit, static_argnames=("adaptive",))
def consistency_loss(new_mask, old_mask, new_seg, old_seg, iou_weight,
                     adaptive=True):
    epsilon = 1e-5
    total = int(np.prod(new_mask.shape))

    nm = _as_rows(new_mask)
    om = _as_rows(old_mask)
    ns = _as_rows(new_seg)
    osg = _as_rows(old_seg)

    rows = nm.shape[0]
    tile_r = min(DEFAULT_TILE_ROWS, _round_up(rows, SUBLANE))
    tile_r = _round_up(tile_r, SUBLANE)

    num_blocks = pl.cdiv(rows, tile_r)
    num_slices = max(1, min(_num_slices_for_hw(), num_blocks))
    steps_per_slice = pl.cdiv(num_blocks, num_slices)
    coverage_rows = num_slices * steps_per_slice * tile_r
    need_mask = coverage_rows > rows
    need_clamp = num_slices * steps_per_slice > num_blocks
    # Clamped duplicate blocks must be masked out (never accumulated twice).
    assert (not need_clamp) or need_mask

    if need_clamp:
        def in_index_map(c, i):
            return (jnp.minimum(c * steps_per_slice + i, num_blocks - 1), 0)
    else:
        def in_index_map(c, i):
            return (c * steps_per_slice + i, 0)

    in_spec = pl.BlockSpec((tile_r, LANE), in_index_map)
    out_spec = pl.BlockSpec((1, 4 * SUBLANE, LANE), lambda c, i: (c, 0, 0))

    kernel = functools.partial(
        _consistency_kernel,
        tile_r=tile_r, valid_rows=rows,
        steps_per_slice=steps_per_slice, need_mask=need_mask)

    in_bytes = sum(int(np.prod(a.shape)) * a.dtype.itemsize
                   for a in (nm, om, ns, osg))
    cost = pl.CostEstimate(
        flops=22 * total, transcendentals=0,
        bytes_accessed=in_bytes + num_slices * 4 * SUBLANE * LANE * 4)

    partials = pl.pallas_call(
        kernel,
        out_shape=jax.ShapeDtypeStruct((num_slices, 4 * SUBLANE, LANE),
                                       jnp.float32),
        grid_spec=pltpu.PrefetchScalarGridSpec(
            num_scalar_prefetch=0,
            grid=(num_slices, steps_per_slice),
            in_specs=[in_spec, in_spec, in_spec, in_spec],
            out_specs=out_spec,
            scratch_shapes=[pltpu.VMEM((SUBLANE, LANE), jnp.float32)] * 4,
        ),
        compiler_params=pltpu.CompilerParams(
            dimension_semantics=("parallel", "arbitrary"),
            vmem_limit_bytes=32 * 1024 * 1024),
        cost_estimate=cost,
    )(nm, om, ns, osg)

    sums = partials.reshape(num_slices, 4, SUBLANE, LANE).sum(axis=(0, 2, 3))
    inter, s_osom, s_num, s_clamp = sums[0], sums[1], sums[2], sums[3]

    # Vanilla soft Jaccard on (old_seg, old_mask): union = sum(os)+sum(om)-inter.
    union = s_osom - inter
    vanilla_jaccard = 1.0 - (inter + epsilon) / (union + epsilon)

    # sum(clamp(...) + eps) == sum(clamp(...)) + eps * N.
    perturbation_loss = s_num / (s_clamp + epsilon * total)

    if adaptive:
        return (1.0 - iou_weight) * vanilla_jaccard + iou_weight * perturbation_loss
    return 0.5 * vanilla_jaccard + 0.5 * perturbation_loss


def _reference(new_mask, old_mask, new_seg, old_seg, iou_weight, adaptive=True):
    eps = 1e-5
    nm, om, ns, osg = [a.astype(jnp.float32) for a in
                       (new_mask, old_mask, new_seg, old_seg)]

    def diff(a, b):
        return a * (1 - b) + b * (1 - a)

    inter = jnp.sum(osg * om)
    union = jnp.sum(osg) + jnp.sum(om) - inter
    jac = 1.0 - (inter + eps) / (union + eps)
    pert = jnp.sum(diff(diff(nm, om), diff(ns, osg))) / jnp.sum(
        jnp.clip(nm + om + ns + osg, 0, 1) + eps)
    if adaptive:
        return (1 - iou_weight) * jac + iou_weight * pert
    return 0.5 * jac + 0.5 * pert


if __name__ == "__main__":
    key = jax.random.PRNGKey(0)
    k1, k2, k3, k4 = jax.random.split(key, 4)
    shape = (2, 4, 16, 16)  # NCHW, like the PyTorch module's mask/seg inputs
    new_mask = jax.random.uniform(k1, shape, jnp.float32)
    old_mask = jax.random.uniform(k2, shape, jnp.float32)
    new_seg = jax.random.uniform(k3, shape, jnp.float32)
    old_seg = jax.random.uniform(k4, shape, jnp.float32)
    iou_weight = jnp.float32(0.3)

    loss = consistency_loss(new_mask, old_mask, new_seg, old_seg, iou_weight)
    loss = jax.block_until_ready(loss)

    ref = _reference(new_mask, old_mask, new_seg, old_seg, iou_weight)
    assert jnp.allclose(loss, ref, rtol=1e-4, atol=1e-5), (loss, ref)
    print("KERNEL_OK")
</pallas_src>

<mosaic_0001>
module attributes {stable_mosaic.version = 11 : i64} {
  func.func @_consistency_kernel(%arg0: i32, %arg1: i32, %arg2: memref<16x128xf32, #tpu.memory_space<vmem>>, %arg3: memref<16x128xf32, #tpu.memory_space<vmem>>, %arg4: memref<16x128xf32, #tpu.memory_space<vmem>>, %arg5: memref<16x128xf32, #tpu.memory_space<vmem>>, %arg6: memref<1x32x128xf32, #tpu.memory_space<vmem>>, %arg7: memref<8x128xf32, #tpu.memory_space<vmem>>, %arg8: memref<8x128xf32, #tpu.memory_space<vmem>>, %arg9: memref<8x128xf32, #tpu.memory_space<vmem>>, %arg10: memref<8x128xf32, #tpu.memory_space<vmem>>) attributes {dimension_semantics = [#tpu.dimension_semantics<parallel>, #tpu.dimension_semantics<arbitrary>], iteration_bounds = array<i64: 1, 1>, scalar_prefetch = 0 : i64, scratch_operands = 4 : i64, tpu.core_type = #tpu.core_type<tc>, window_params = [{transform_indices = @transform_0, window_bounds = array<i64: 16, 128>}, {transform_indices = @transform_1, window_bounds = array<i64: 16, 128>}, {transform_indices = @transform_2, window_bounds = array<i64: 16, 128>}, {transform_indices = @transform_3, window_bounds = array<i64: 16, 128>}, {transform_indices = @transform_4, window_bounds = array<i64: 1, 32, 128>}]} {
    %c0_i32 = arith.constant 0 : i32
    %0 = arith.cmpi eq, %arg1, %c0_i32 : i32
    %1 = arith.extui %0 : i1 to i32
    %c0_i32_0 = arith.constant 0 : i32
    %2 = arith.cmpi ne, %1, %c0_i32_0 : i32
    scf.if %2 {
      %cst_34 = arith.constant 0.000000e+00 : f32
      %52 = vector.broadcast %cst_34 : f32 to vector<8x128xf32>
      %c0_35 = arith.constant 0 : index
      %c0_36 = arith.constant 0 : index
      %53 = vector.load %arg7[%c0_35, %c0_36] : memref<8x128xf32, #tpu.memory_space<vmem>>, vector<8x128xf32>
      tpu.vector_store %arg7[%c0_35, %c0_36], %52 {strides = array<i32>} : memref<8x128xf32, #tpu.memory_space<vmem>>, vector<8x128xf32>,
      %cst_37 = arith.constant 0.000000e+00 : f32
      %54 = vector.broadcast %cst_37 : f32 to vector<8x128xf32>
      %c0_38 = arith.constant 0 : index
      %c0_39 = arith.constant 0 : index
      %55 = vector.load %arg8[%c0_38, %c0_39] : memref<8x128xf32, #tpu.memory_space<vmem>>, vector<8x128xf32>
      tpu.vector_store %arg8[%c0_38, %c0_39], %54 {strides = array<i32>} : memref<8x128xf32, #tpu.memory_space<vmem>>, vector<8x128xf32>,
      %cst_40 = arith.constant 0.000000e+00 : f32
      %56 = vector.broadcast %cst_40 : f32 to vector<8x128xf32>
      %c0_41 = arith.constant 0 : index
      %c0_42 = arith.constant 0 : index
      %57 = vector.load %arg9[%c0_41, %c0_42] : memref<8x128xf32, #tpu.memory_space<vmem>>, vector<8x128xf32>
      tpu.vector_store %arg9[%c0_41, %c0_42], %56 {strides = array<i32>} : memref<8x128xf32, #tpu.memory_space<vmem>>, vector<8x128xf32>,
      %cst_43 = arith.constant 0.000000e+00 : f32
      %58 = vector.broadcast %cst_43 : f32 to vector<8x128xf32>
      %c0_44 = arith.constant 0 : index
      %c0_45 = arith.constant 0 : index
      %59 = vector.load %arg10[%c0_44, %c0_45] : memref<8x128xf32, #tpu.memory_space<vmem>>, vector<8x128xf32>
      tpu.vector_store %arg10[%c0_44, %c0_45], %58 {strides = array<i32>} : memref<8x128xf32, #tpu.memory_space<vmem>>, vector<8x128xf32>,
    } else {
    }
    %c0 = arith.constant 0 : index
    %c0_1 = arith.constant 0 : index
    %3 = vector.load %arg2[%c0, %c0_1] : memref<16x128xf32, #tpu.memory_space<vmem>>, vector<16x128xf32>
    %c0_2 = arith.constant 0 : index
    %c0_3 = arith.constant 0 : index
    %4 = vector.load %arg3[%c0_2, %c0_3] : memref<16x128xf32, #tpu.memory_space<vmem>>, vector<16x128xf32>
    %c0_4 = arith.constant 0 : index
    %c0_5 = arith.constant 0 : index
    %5 = vector.load %arg4[%c0_4, %c0_5] : memref<16x128xf32, #tpu.memory_space<vmem>>, vector<16x128xf32>
    %c0_6 = arith.constant 0 : index
    %c0_7 = arith.constant 0 : index
    %6 = vector.load %arg5[%c0_6, %c0_7] : memref<16x128xf32, #tpu.memory_space<vmem>>, vector<16x128xf32>
    %7 = arith.addf %3, %4 : vector<16x128xf32>
    %8 = arith.addf %5, %6 : vector<16x128xf32>
    %9 = arith.mulf %3, %4 : vector<16x128xf32>
    %cst = arith.constant 2.000000e+00 : f32
    %10 = vector.broadcast %cst : f32 to vector<16x128xf32>
    %11 = arith.mulf %10, %9 : vector<16x128xf32>
    %12 = arith.subf %7, %11 : vector<16x128xf32>
    %13 = arith.mulf %5, %6 : vector<16x128xf32>
    %cst_8 = arith.constant 2.000000e+00 : f32
    %14 = vector.broadcast %cst_8 : f32 to vector<16x128xf32>
    %15 = arith.mulf %14, %13 : vector<16x128xf32>
    %16 = arith.subf %8, %15 : vector<16x128xf32>
    %17 = arith.addf %12, %16 : vector<16x128xf32>
    %18 = arith.mulf %12, %16 : vector<16x128xf32>
    %cst_9 = arith.constant 2.000000e+00 : f32
    %19 = vector.broadcast %cst_9 : f32 to vector<16x128xf32>
    %20 = arith.mulf %19, %18 : vector<16x128xf32>
    %21 = arith.subf %17, %20 : vector<16x128xf32>
    %22 = arith.addf %7, %8 : vector<16x128xf32>
    %cst_10 = arith.constant 0.000000e+00 : f32
    %cst_11 = arith.constant 1.000000e+00 : f32
    %23 = vector.broadcast %cst_10 : f32 to vector<16x128xf32>
    %24 = arith.maximumf %23, %22 : vector<16x128xf32>
    %25 = vector.broadcast %cst_11 : f32 to vector<16x128xf32>
    %26 = arith.minimumf %25, %24 : vector<16x128xf32>
    %c0_12 = arith.constant 0 : index
    %c0_13 = arith.constant 0 : index
    %27 = vector.load %arg7[%c0_12, %c0_13] : memref<8x128xf32, #tpu.memory_space<vmem>>, vector<8x128xf32>
    %28 = arith.mulf %6, %4 : vector<16x128xf32>
    %29 = vector.shape_cast %28 : vector<16x128xf32> to vector<2x8x128xf32>
    %cst_14 = arith.constant dense<0.000000e+00> : vector<8x128xf32>
    %30 = vector.multi_reduction <add>, %29, %cst_14 [0] : vector<2x8x128xf32> to vector<8x128xf32>
    %31 = arith.addf %27, %30 : vector<8x128xf32>
    %c0_15 = arith.constant 0 : index
    %c0_16 = arith.constant 0 : index
    %32 = vector.load %arg7[%c0_15, %c0_16] : memref<8x128xf32, #tpu.memory_space<vmem>>, vector<8x128xf32>
    tpu.vector_store %arg7[%c0_15, %c0_16], %31 {strides = array<i32>} : memref<8x128xf32, #tpu.memory_space<vmem>>, vector<8x128xf32>,
    %c0_17 = arith.constant 0 : index
    %c0_18 = arith.constant 0 : index
    %33 = vector.load %arg8[%c0_17, %c0_18] : memref<8x128xf32, #tpu.memory_space<vmem>>, vector<8x128xf32>
    %34 = arith.addf %6, %4 : vector<16x128xf32>
    %35 = vector.shape_cast %34 : vector<16x128xf32> to vector<2x8x128xf32>
    %cst_19 = arith.constant dense<0.000000e+00> : vector<8x128xf32>
    %36 = vector.multi_reduction <add>, %35, %cst_19 [0] : vector<2x8x128xf32> to vector<8x128xf32>
    %37 = arith.addf %33, %36 : vector<8x128xf32>
    %c0_20 = arith.constant 0 : index
    %c0_21 = arith.constant 0 : index
    %38 = vector.load %arg8[%c0_20, %c0_21] : memref<8x128xf32, #tpu.memory_space<vmem>>, vector<8x128xf32>
    tpu.vector_store %arg8[%c0_20, %c0_21], %37 {strides = array<i32>} : memref<8x128xf32, #tpu.memory_space<vmem>>, vector<8x128xf32>,
    %c0_22 = arith.constant 0 : index
    %c0_23 = arith.constant 0 : index
    %39 = vector.load %arg9[%c0_22, %c0_23] : memref<8x128xf32, #tpu.memory_space<vmem>>, vector<8x128xf32>
    %40 = vector.shape_cast %21 : vector<16x128xf32> to vector<2x8x128xf32>
    %cst_24 = arith.constant dense<0.000000e+00> : vector<8x128xf32>
    %41 = vector.multi_reduction <add>, %40, %cst_24 [0] : vector<2x8x128xf32> to vector<8x128xf32>
    %42 = arith.addf %39, %41 : vector<8x128xf32>
    %c0_25 = arith.constant 0 : index
    %c0_26 = arith.constant 0 : index
    %43 = vector.load %arg9[%c0_25, %c0_26] : memref<8x128xf32, #tpu.memory_space<vmem>>, vector<8x128xf32>
    tpu.vector_store %arg9[%c0_25, %c0_26], %42 {strides = array<i32>} : memref<8x128xf32, #tpu.memory_space<vmem>>, vector<8x128xf32>,
    %c0_27 = arith.constant 0 : index
    %c0_28 = arith.constant 0 : index
    %44 = vector.load %arg10[%c0_27, %c0_28] : memref<8x128xf32, #tpu.memory_space<vmem>>, vector<8x128xf32>
    %45 = vector.shape_cast %26 : vector<16x128xf32> to vector<2x8x128xf32>
    %cst_29 = arith.constant dense<0.000000e+00> : vector<8x128xf32>
    %46 = vector.multi_reduction <add>, %45, %cst_29 [0] : vector<2x8x128xf32> to vector<8x128xf32>
    %47 = arith.addf %44, %46 : vector<8x128xf32>
    %c0_30 = arith.constant 0 : index
    %c0_31 = arith.constant 0 : index
    %48 = vector.load %arg10[%c0_30, %c0_31] : memref<8x128xf32, #tpu.memory_space<vmem>>, vector<8x128xf32>
    tpu.vector_store %arg10[%c0_30, %c0_31], %47 {strides = array<i32>} : memref<8x128xf32, #tpu.memory_space<vmem>>, vector<8x128xf32>,
    %c0_i32_32 = arith.constant 0 : i32
    %49 = arith.cmpi eq, %arg1, %c0_i32_32 : i32
    %50 = arith.extui %49 : i1 to i32
    %c0_i32_33 = arith.constant 0 : i32
    %51 = arith.cmpi ne, %50, %c0_i32_33 : i32
    scf.if %51 {
      %c0_34 = arith.constant 0 : index
      %c0_35 = arith.constant 0 : index
      %52 = vector.load %arg7[%c0_34, %c0_35] : memref<8x128xf32, #tpu.memory_space<vmem>>, vector<8x128xf32>
      %c0_36 = arith.constant 0 : index
      %c0_37 = arith.constant 0 : index
      %53 = vector.load %arg8[%c0_36, %c0_37] : memref<8x128xf32, #tpu.memory_space<vmem>>, vector<8x128xf32>
      %c0_38 = arith.constant 0 : index
      %c0_39 = arith.constant 0 : index
      %54 = vector.load %arg9[%c0_38, %c0_39] : memref<8x128xf32, #tpu.memory_space<vmem>>, vector<8x128xf32>
      %c0_40 = arith.constant 0 : index
      %c0_41 = arith.constant 0 : index
      %55 = vector.load %arg10[%c0_40, %c0_41] : memref<8x128xf32, #tpu.memory_space<vmem>>, vector<8x128xf32>
      %56 = tpu.concatenate %52, %53, %54, %55 in 0 : vector<8x128xf32>, vector<8x128xf32>, vector<8x128xf32>, vector<8x128xf32> -> vector<32x128xf32>
      %57 = vector.shape_cast %56 : vector<32x128xf32> to vector<1x32x128xf32>
      %c0_42 = arith.constant 0 : index
      %c0_43 = arith.constant 0 : index
      %c0_44 = arith.constant 0 : index
      %58 = vector.load %arg6[%c0_42, %c0_43, %c0_44] : memref<1x32x128xf32, #tpu.memory_space<vmem>>, vector<1x32x128xf32>
      tpu.vector_store %arg6[%c0_42, %c0_43, %c0_44], %57 {strides = array<i32>} : memref<1x32x128xf32, #tpu.memory_space<vmem>>, vector<1x32x128xf32>,
    } else {
    }
    return
  }
  func.func @transform_0(%arg0: i32, %arg1: i32) -> (i32, i32) {
    %c1_i32 = arith.constant 1 : i32
    %0 = arith.muli %arg0, %c1_i32 : i32
    %1 = arith.addi %0, %arg1 : i32
    %c0_i32 = arith.constant 0 : i32
    %c0_i32_0 = arith.constant 0 : i32
    return %1, %c0_i32 : i32, i32
  }
  func.func @transform_1(%arg0: i32, %arg1: i32) -> (i32, i32) {
    %c1_i32 = arith.constant 1 : i32
    %0 = arith.muli %arg0, %c1_i32 : i32
    %1 = arith.addi %0, %arg1 : i32
    %c0_i32 = arith.constant 0 : i32
    %c0_i32_0 = arith.constant 0 : i32
    return %1, %c0_i32 : i32, i32
  }
  func.func @transform_2(%arg0: i32, %arg1: i32) -> (i32, i32) {
    %c1_i32 = arith.constant 1 : i32
    %0 = arith.muli %arg0, %c1_i32 : i32
    %1 = arith.addi %0, %arg1 : i32
    %c0_i32 = arith.constant 0 : i32
    %c0_i32_0 = arith.constant 0 : i32
    return %1, %c0_i32 : i32, i32
  }
  func.func @transform_3(%arg0: i32, %arg1: i32) -> (i32, i32) {
    %c1_i32 = arith.constant 1 : i32
    %0 = arith.muli %arg0, %c1_i32 : i32
    %1 = arith.addi %0, %arg1 : i32
    %c0_i32 = arith.constant 0 : i32
    %c0_i32_0 = arith.constant 0 : i32
    return %1, %c0_i32 : i32, i32
  }
  func.func @transform_4(%arg0: i32, %arg1: i32) -> (i32, i32, i32) {
    %c0_i32 = arith.constant 0 : i32
    %c0_i32_0 = arith.constant 0 : i32
    %c0_i32_1 = arith.constant 0 : i32
    return %arg0, %c0_i32, %c0_i32_0 : i32, i32, i32
  }
}

</mosaic_0001>

<bundles_post_ra>
// kernel: consistency_loss.1
= control target key start
LH: loop header
LB: loop body
LE: loop exit
PB: predicated region body
PF: predicated region fallthrough
CT: control target
= control target key end

     0   :  { %s271_s1 = inlined_call_operand.vmem [shape: f32[16,128], index: 1, kind: input, shape index: {}]   ;;  %s272_s3 = inlined_call_operand.vmem [shape: f32[16,128], index: 3, kind: input, shape index: {}]   ;;  %s273_s0 = inlined_call_operand.vmem [shape: f32[16,128], index: 0, kind: input, shape index: {}]   ;;  %s274_s2 = inlined_call_operand.vmem [shape: f32[16,128], index: 2, kind: input, shape index: {}]   ;;  %s275_s4 = inlined_call_operand.vmem [shape: f32[1,32,128], index: 4, kind: output, shape index: {}]  }
   0x1   :  { %v115_v0 = vld [vmem:[%s271_s1] sm:$0xff]  ;;  %v116_v1 = vld [vmem:[%s271_s1 + $0x8] sm:$0xff] }
   0x2   :  { %v119_v2 = vld [vmem:[%s272_s3] sm:$0xff]  ;;  %v120_v3 = vld [vmem:[%s272_s3 + $0x8] sm:$0xff] }
   0x3   :  { %v152_v4 = vmul.f32 %v119_v2, %v115_v0  ;;  %v158_v5 = vadd.f32 %v119_v2, %v115_v0  ;;  %v113_v6 = vld [vmem:[%s273_s0] sm:$0xff]  ;;  %v114_v7 = vld [vmem:[%s273_s0 + $0x8] sm:$0xff]  ;;  %v153_v8 = vmul.f32 %v120_v3, %v116_v1  ;;  %v159_v9 = vadd.f32 %v120_v3, %v116_v1 }
   0x4   :  { %v117_v10 = vld [vmem:[%s274_s2] sm:$0xff]  ;;  %v118_v11 = vld [vmem:[%s274_s2 + $0x8] sm:$0xff]  ;;  %v121_v12 = vadd.f32 %v115_v0, %v113_v6  ;;  %v122_v13 = vadd.f32 %v116_v1, %v114_v7  ;;  %v125_v16 = vmul.f32 %v115_v0, %v113_v6  ;;  %v126_v17 = vmul.f32 %v116_v1, %v114_v7 }
   0x5   :  { %v123_v14 = vadd.f32 %v119_v2, %v117_v10  ;;  %v124_v15 = vadd.f32 %v120_v3, %v118_v11  ;;  %v154_v18 = vadd.f32 %v153_v8, %v152_v4  ;;  %v160_v19 = vadd.f32 %v159_v9, %v158_v5 }
   0x6   :  { %v131_v20 = vmul.f32 %v119_v2, %v117_v10  ;;  %v132_v21 = vmul.f32 %v120_v3, %v118_v11  ;;  %v127_v22 = vmul.f32 2.0, %v125_v16  ;;  %v128_v23 = vmul.f32 2.0, %v126_v17 }
   0x7   :  { %v145_v24 = vadd.f32 %v123_v14, %v121_v12  ;;  %v146_v25 = vadd.f32 %v124_v15, %v122_v13  ;;  %178 = vst [vmem:[%s275_s4] sm:$0xff] %v154_v18  ;;  %179 = vst [vmem:[%s275_s4 + $0x8] sm:$0xff] %v160_v19 }
   0x8   :  { %v133_v26 = vmul.f32 2.0, %v131_v20  ;;  %v134_v27 = vmul.f32 2.0, %v132_v21  ;;  %v129_v28 = vsub.f32 %v121_v12, %v127_v22  ;;  %v130_v29 = vsub.f32 %v122_v13, %v128_v23 }
   0x9   :  { %v147_v30 = vmax.f32 %v145_v24, 0.0  ;;  %v148_v31 = vmax.f32 %v146_v25, 0.0 }
   0xa   :  { %v135_v32 = vsub.f32 %v123_v14, %v133_v26  ;;  %v136_v33 = vsub.f32 %v124_v15, %v134_v27 }
   0xb   :  { %v149_v34 = vmin.f32 %v147_v30, 1.0  ;;  %v150_v35 = vmin.f32 %v148_v31, 1.0 }
   0xc   :  { %v137_v36 = vadd.f32 %v135_v32, %v129_v28  ;;  %v138_v37 = vadd.f32 %v136_v33, %v130_v29  ;;  %v139_v38 = vmul.f32 %v135_v32, %v129_v28  ;;  %v140_v39 = vmul.f32 %v136_v33, %v130_v29 }
   0xd   :  { %v168_v40 = vadd.f32 %v150_v35, %v149_v34 }
   0xe   :  { %v141_v41 = vmul.f32 2.0, %v139_v38  ;;  %v142_v42 = vmul.f32 2.0, %v140_v39 }
   0xf   :  { %181 = vst [vmem:[%s275_s4 + $0x18] sm:$0xff] %v168_v40 }
  0x10   :  { %v143_v43 = vsub.f32 %v137_v36, %v141_v41  ;;  %v144_v44 = vsub.f32 %v138_v37, %v142_v42 }
  0x12   :  { %v164_v45 = vadd.f32 %v144_v44, %v143_v43 }
  0x14   :  { %180 = vst [vmem:[%s275_s4 + $0x10] sm:$0xff] %v164_v45 }

</bundles_post_ra>
